<compile_context>
chip_gen: v6e
topology: v6e:2x2x1
jax: 0.10.0
libtpu: 0.0.40
codegen_flags: <defaults>
</compile_context>

<pallas_src>
import math

import jax
import jax.numpy as jnp
from jax.experimental import pallas as pl
from jax.experimental.pallas import tpu as pltpu


def _frn_kernel(eps_ref, gamma_ref, beta_ref, x_ref, o_ref):
    # eps_ref: SMEM (1,) f32 scalar; gamma/beta: VMEM (1, W) f32; x/o: (rows, W).
    x = x_ref[...].astype(jnp.float32)
    eps = jnp.abs(eps_ref[0])
    inv = jax.lax.rsqrt(x * x + eps)                  # EUP rsqrt (free slot)
    y = gamma_ref[...] * (x * inv) + beta_ref[...]
    o_ref[...] = y.astype(o_ref.dtype)


def _sublane_multiple(dtype):
    # Packed sublane tiling: 8 rows for 4-byte dtypes, 16 for 2-byte, 32 for 1-byte.
    return max(8, 32 // jnp.dtype(dtype).itemsize)


def _default_block_bytes():
    # v5e: 16 MiB scoped-VMEM default -> ~2 MiB tiles; v6e/v7x: ~4 MiB tiles
    # (we raise vmem_limit_bytes explicitly, staying well under v7x's 64 MiB).
    try:
        kind = jax.devices()[0].device_kind.lower()
    except Exception:
        kind = ""
    if "v5e" in kind or "v5 lite" in kind or "v5litepod" in kind:
        return 2 * 1024 * 1024
    return 4 * 1024 * 1024


def _frn_bulk(xw, gamma_w, beta_w, eps, block_rows, vmem_limit, cost):
    Rw, W = xw.shape
    grid = (pl.cdiv(Rw, block_rows),)
    return pl.pallas_call(
        _frn_kernel,
        out_shape=jax.ShapeDtypeStruct((Rw, W), xw.dtype),
        grid_spec=pltpu.PrefetchScalarGridSpec(
            num_scalar_prefetch=0,
            grid=grid,
            in_specs=[
                pl.BlockSpec(memory_space=pltpu.SMEM),             # eps scalar
                pl.BlockSpec((1, W), lambda i: (0, 0)),            # gamma (resident, f32)
                pl.BlockSpec((1, W), lambda i: (0, 0)),            # beta  (resident, f32)
                pl.BlockSpec((block_rows, W), lambda i: (i, 0)),   # x tile
            ],
            out_specs=pl.BlockSpec((block_rows, W), lambda i: (i, 0)),
        ),
        compiler_params=pltpu.CompilerParams(
            dimension_semantics=("parallel",),
            vmem_limit_bytes=vmem_limit),
        cost_estimate=cost,
    )(eps, gamma_w, beta_w, xw)


def frn_pallas(x, gamma, beta, eps, *, target_block_bytes=None):
    """y = gamma * (x * rsqrt(x^2 + |eps|)) + beta, gamma/beta broadcast on last axis."""
    orig_shape = x.shape
    dtype = x.dtype
    C = orig_shape[-1]
    R = x.size // C
    itemsize = jnp.dtype(dtype).itemsize
    if target_block_bytes is None:
        target_block_bytes = _default_block_bytes()

    gamma32 = jnp.reshape(gamma, (1, C)).astype(jnp.float32)
    beta32 = jnp.reshape(beta, (1, C)).astype(jnp.float32)
    eps32 = jnp.reshape(eps, (1,)).astype(jnp.float32)

    # Minimal lane-dense widening: smallest k with (k*C) % 128 == 0.
    k = 128 // math.gcd(C, 128)
    W = k * C
    R_bulk = (R // k) * k

    if R_bulk == 0:
        # Degenerate tiny input (< one lane-dense row): plain jnp.
        x32 = x.astype(jnp.float32)
        y = gamma32 * (x32 * jax.lax.rsqrt(x32 * x32 + jnp.abs(eps32))) + beta32
        return jnp.reshape(y.astype(dtype), orig_shape)

    Rw = R_bulk // k
    sub = _sublane_multiple(dtype)
    rows_target = max(sub, target_block_bytes // (W * itemsize))

    if rows_target >= Rw:
        # Whole bulk fits one tile: still split into >=4 grid steps so the
        # 'parallel' axis gives >=2 pipelined steps per TensorCore on v7x.
        block_rows = max(sub, (Rw // 4) // sub * sub)
    else:
        block_rows = max(sub, (rows_target // sub) * sub)
    if block_rows > Rw:
        block_rows = Rw          # full-extent row block (allowed by Pallas)

    # VMEM budget: x double-buffered + out double-buffered + params + margin.
    block_bytes = block_rows * W * itemsize
    vmem_needed = 4 * block_bytes + 4 * W * 4 + (2 << 20)
    vmem_limit = int(min(max(vmem_needed, 16 << 20), 64 << 20))

    n_bulk = R_bulk * C
    cost = pl.CostEstimate(
        flops=5 * n_bulk,
        transcendentals=n_bulk,
        bytes_accessed=2 * n_bulk * itemsize + 2 * W * 4 + 4,
    )

    gamma_w = jnp.tile(gamma32, (1, k))
    beta_w = jnp.tile(beta32, (1, k))

    if R_bulk == R:
        # Common case: single HBM pass, no slice/pad round-trips.
        xw = jnp.reshape(x, (Rw, W))
        yw = _frn_bulk(xw, gamma_w, beta_w, eps32, block_rows, vmem_limit, cost)
        return jnp.reshape(yw, orig_shape)

    # Awkward row count: run the lane-dense bulk through Pallas; finish the
    # (< k)-row tail with plain jnp (microseconds of data).
    x2d = jnp.reshape(x, (R, C))
    xw = jnp.reshape(x2d[:R_bulk], (Rw, W))
    yw = _frn_bulk(xw, gamma_w, beta_w, eps32, block_rows, vmem_limit, cost)
    x_tail = x2d[R_bulk:].astype(jnp.float32)
    y_tail = (gamma32 * (x_tail * jax.lax.rsqrt(x_tail * x_tail + jnp.abs(eps32)))
              + beta32).astype(dtype)
    y2d = jnp.concatenate([jnp.reshape(yw, (R_bulk, C)), y_tail], axis=0)
    return jnp.reshape(y2d, orig_shape)


if __name__ == "__main__":
    key = jax.random.PRNGKey(0)
    kx, kg, kb, kx2, kx3 = jax.random.split(key, 5)

    def ref_fn(x, gamma, beta, eps):
        x32 = x.astype(jnp.float32)
        g = jnp.reshape(gamma, (1, -1)).astype(jnp.float32)
        b = jnp.reshape(beta, (1, -1)).astype(jnp.float32)
        y = g * (x32 * jax.lax.rsqrt(x32 * x32 + jnp.abs(eps.astype(jnp.float32)))) + b
        return y.astype(x.dtype)

    # 1) Main case consistent with the module: x ends in `channels`.
    batch, seq, channels = 2, 8, 32
    x = jax.random.normal(kx, (batch, seq, channels), dtype=jnp.float32)
    gamma = 1.0 + 0.1 * jax.random.normal(kg, (1, channels), dtype=jnp.float32)
    beta = 0.1 * jax.random.normal(kb, (1, channels), dtype=jnp.float32)
    eps = jnp.full((1,), 1e-6, dtype=jnp.float32)

    y = jax.block_until_ready(frn_pallas(x, gamma, beta, eps))
    y_ref = ref_fn(x, gamma, beta, eps)
    assert y.shape == x.shape and y.dtype == x.dtype
    assert jnp.allclose(y, y_ref, rtol=1e-4, atol=1e-5), "mismatch (main case)"

    # 2) Awkward channel/row counts: C=80 -> k=8; R=19 leaves a 3-row tail.
    x2 = jax.random.normal(kx2, (19, 80), dtype=jnp.float32)
    g2 = 1.0 + 0.1 * jax.random.normal(kg, (1, 80), dtype=jnp.float32)
    b2 = 0.1 * jax.random.normal(kb, (1, 80), dtype=jnp.float32)
    y2 = jax.block_until_ready(frn_pallas(x2, g2, b2, eps))
    assert jnp.allclose(y2, ref_fn(x2, g2, b2, eps), rtol=1e-4, atol=1e-5), \
        "mismatch (remainder case)"

    # 3) bf16 input (exercises the 16-row packed-sublane block rounding).
    x3 = jax.random.normal(kx3, (4, 8, 64), dtype=jnp.bfloat16)
    g3 = jnp.ones((1, 64), dtype=jnp.float32)
    b3 = jnp.zeros((1, 64), dtype=jnp.float32)
    y3 = jax.block_until_ready(frn_pallas(x3, g3, b3, eps))
    assert y3.dtype == jnp.bfloat16
    assert jnp.allclose(y3.astype(jnp.float32),
                        ref_fn(x3, g3, b3, eps).astype(jnp.float32),
                        rtol=2e-2, atol=2e-2), "mismatch (bf16 case)"

    print("KERNEL_OK")
</pallas_src>

<mosaic_0001>
module attributes {stable_mosaic.version = 11 : i64} {
  func.func @_frn_kernel(%arg0: i32, %arg1: memref<1xf32, #tpu.memory_space<smem>>, %arg2: memref<1x128xf32, #tpu.memory_space<vmem>>, %arg3: memref<1x128xf32, #tpu.memory_space<vmem>>, %arg4: memref<4x128xf32, #tpu.memory_space<vmem>>, %arg5: memref<4x128xf32, #tpu.memory_space<vmem>>) attributes {dimension_semantics = [#tpu.dimension_semantics<parallel>], iteration_bounds = array<i64: 1>, scalar_prefetch = 0 : i64, scratch_operands = 0 : i64, tpu.core_type = #tpu.core_type<tc>, window_params = [{transform_indices = @transform_0, window_bounds = array<i64: 1>}, {pipeline_mode = #tpu.pipeline_mode<synchronous>, transform_indices = @transform_1, window_bounds = array<i64: 1, 128>}, {pipeline_mode = #tpu.pipeline_mode<synchronous>, transform_indices = @transform_2, window_bounds = array<i64: 1, 128>}, {transform_indices = @transform_3, window_bounds = array<i64: 4, 128>}, {transform_indices = @transform_4, window_bounds = array<i64: 4, 128>}]} {
    %c0 = arith.constant 0 : index
    %c0_0 = arith.constant 0 : index
    %0 = vector.load %arg4[%c0, %c0_0] : memref<4x128xf32, #tpu.memory_space<vmem>>, vector<4x128xf32>
    %c0_1 = arith.constant 0 : index
    %1 = memref.load %arg1[%c0_1] : memref<1xf32, #tpu.memory_space<smem>>
    %2 = math.absf %1 : f32
    %3 = arith.mulf %0, %0 : vector<4x128xf32>
    %4 = vector.broadcast %2 : f32 to vector<4x128xf32>
    %5 = arith.addf %3, %4 : vector<4x128xf32>
    %6 = math.rsqrt %5 : vector<4x128xf32>
    %c0_2 = arith.constant 0 : index
    %c0_3 = arith.constant 0 : index
    %7 = vector.load %arg2[%c0_2, %c0_3] : memref<1x128xf32, #tpu.memory_space<vmem>>, vector<1x128xf32>
    %8 = arith.mulf %0, %6 : vector<4x128xf32>
    %9 = vector.broadcast %7 : vector<1x128xf32> to vector<4x128xf32>
    %10 = arith.mulf %9, %8 : vector<4x128xf32>
    %c0_4 = arith.constant 0 : index
    %c0_5 = arith.constant 0 : index
    %11 = vector.load %arg3[%c0_4, %c0_5] : memref<1x128xf32, #tpu.memory_space<vmem>>, vector<1x128xf32>
    %12 = vector.broadcast %11 : vector<1x128xf32> to vector<4x128xf32>
    %13 = arith.addf %10, %12 : vector<4x128xf32>
    %c0_6 = arith.constant 0 : index
    %c0_7 = arith.constant 0 : index
    %14 = vector.load %arg5[%c0_6, %c0_7] : memref<4x128xf32, #tpu.memory_space<vmem>>, vector<4x128xf32>
    tpu.vector_store %arg5[%c0_6, %c0_7], %13 {strides = array<i32>} : memref<4x128xf32, #tpu.memory_space<vmem>>, vector<4x128xf32>,
    return
  }
  func.func @transform_0(%arg0: i32) -> i32 {
    %c0_i32 = arith.constant 0 : i32
    %c0_i32_0 = arith.constant 0 : i32
    return %c0_i32 : i32
  }
  func.func @transform_1(%arg0: i32) -> (i32, i32) {
    %c0_i32 = arith.constant 0 : i32
    %c0_i32_0 = arith.constant 0 : i32
    %c0_i32_1 = arith.constant 0 : i32
    return %c0_i32, %c0_i32_0 : i32, i32
  }
  func.func @transform_2(%arg0: i32) -> (i32, i32) {
    %c0_i32 = arith.constant 0 : i32
    %c0_i32_0 = arith.constant 0 : i32
    %c0_i32_1 = arith.constant 0 : i32
    return %c0_i32, %c0_i32_0 : i32, i32
  }
  func.func @transform_3(%arg0: i32) -> (i32, i32) {
    %c0_i32 = arith.constant 0 : i32
    %c0_i32_0 = arith.constant 0 : i32
    return %arg0, %c0_i32 : i32, i32
  }
  func.func @transform_4(%arg0: i32) -> (i32, i32) {
    %c0_i32 = arith.constant 0 : i32
    %c0_i32_0 = arith.constant 0 : i32
    return %arg0, %c0_i32 : i32, i32
  }
}

</mosaic_0001>

<bundles_post_ra>
// kernel: tpu_custom_call.1
= control target key start
LH: loop header
LB: loop body
LE: loop exit
PB: predicated region body
PF: predicated region fallthrough
CT: control target
= control target key end

     0   :  { %10 = vsyncpa [#allocation4], 0  ;;  %s163_s0 = inlined_call_operand.<no memory space> [shape: f32[1], index: 0, kind: input, shape index: {}]   ;;  %s164_s1 = inlined_call_operand.vmem [shape: f32[1,128], index: 1, kind: input, shape index: {}]   ;;  %s165_s2 = inlined_call_operand.hbm [shape: f32[1,128], index: 2, kind: input, shape index: {}]   ;;  %s166_s3 = inlined_call_operand.vmem [shape: f32[4,128], index: 3, kind: input, shape index: {}]   ;;  %s167_s4 = inlined_call_operand.hbm [shape: f32[4,128], index: 4, kind: output, shape index: {}]  }
   0x1   :  { %11 = vsyncpa [#allocation5], 0  ;;  %s121_s15 = smov [#allocation3]  }
   0x2   :  { %s22_s16 = sshll.u32 %s121_s15, 4  ;;  %s23_s16 = int_to_ptr.vmem [resolvable:$true] %s22_s16 }
   0x3   :  { %s85_s17 = scalar_lea.vmem %s23_s16, 16  ;;  %s89_s18 = scalar_lea.vmem %s23_s16, 32 }
   0x4   :  { %p86_p0 = scmp.ne.s32.totalorder %s23_s16, %s85_s17  ;;  %p90_p1 = scmp.lt.s32.totalorder %s23_s16, %s23_s16 }
   0x5   :  { %p91_p2 = scmp.lt.s32.totalorder %s89_s18, %s85_s17 }
   0x7   :  { %p92_p3 = por %p91_p2, %p90_p1 }
   0x9   :  { %p93_p4 = pnand %p92_p3, %p86_p0 }
   0xb   :  { %96 = shalt.err (!%p93_p4)
}
   0xc   :  { %25 = dma.hbm_to_vmem [thread:$0]  %s165_s2, 16, %s23_s16, [#allocation4]  }
   0xd   :  { %117 = dma.done.wait [#allocation4], 16  }
   0xe   :  { %118 = vsyncadd [#allocation4], 4294967280  ;;  %s33_s23 = sand.u32 2147483647, %s163_s0  ;;  %v31_v0 = vld [vmem:[%s166_s3] sm:$0xf] }
   0xf   :  { %v35_v1 = vstv %s33_s23  ;;  %v34_v2 = vmul.f32 %v31_v0, %v31_v0  ;;  %v71_v5 = vld [vmem:[%s164_s1] ss:$0 sm:$0xff]  ;;  %s122_s2 = smov [#allocation6]  }
  0x10   :  { %v72_v7 = vld [vmem:[#allocation3] ss:$0 sm:$0xff]  ;;  %s62_s28 = sshll.u32 %s122_s2, 4  ;;  %s63_s28 = int_to_ptr.vmem [resolvable:$true] %s62_s28 }
  0x11   :  { %v36_v3 = vadd.f32 %v35_v1, %v34_v2  ;;  %s97_s0 = scalar_lea.vmem %s63_s28, 64  ;;  %p102_p6 = scmp.lt.s32.totalorder %s63_s28, %s63_s28 }
  0x12   :  { %p98_p5 = scmp.ne.s32.totalorder %s63_s28, %s97_s0  ;;  %p103_p7 = scmp.lt.s32.totalorder %s97_s0, %s97_s0 }
  0x13   :  { %75 = vrsqrt.f32 %v36_v3 }
  0x14   :  { %p104_p8 = por %p103_p7, %p102_p6 }
  0x16   :  { %p105_p9 = pnand %p104_p8, %p98_p5 }
  0x20   :  { %v76_v4 = vpop.eup %75 }
  0x21   :  { %v39_v6 = vmul.f32 %v76_v4, %v31_v0 }
  0x23   :  { %v46_v8 = vmul.f32 %v71_v5, %v39_v6 }
  0x25   :  { %v54_v9 = vadd.f32 %v72_v7, %v46_v8 }
  0x27   :  { %55 = vst [vmem:[#allocation6] sm:$0xf] %v54_v9 }
  0x28   :  { %108 = shalt.err (!%p105_p9)
}
  0x29   :  { %65 = dma.vmem_to_hbm [thread:$0]  %s63_s28, 64, %s167_s4, [#allocation5]  }
  0x2a   :  { %119 = dma.done.wait [#allocation5], 64  }
  0x2b   :  { %120 = vsyncadd [#allocation5], 4294967232 }
  0x2c   :  { %69 = vsyncpa [#allocation4], 1 }
  0x2d   :  { %70 = vsyncpa [#allocation5], 1 }

</bundles_post_ra>
